<compile_context>
chip_gen: v6e
topology: v6e:2x2x1
jax: 0.10.0
libtpu: 0.0.40
codegen_flags: <defaults>
</compile_context>

<pallas_src>
import functools

import jax
import jax.numpy as jnp
from jax import lax
from jax.experimental import pallas as pl
from jax.experimental.pallas import tpu as pltpu


def _conv_layer_kernel(x_ref, keep_ref, a_ref, bias_ref, out_ref, *,
                       Tt, KH, pt, dt):
    """Single invocation; every ref is a whole array resident in VMEM.

    x_ref, keep_ref, bias_ref, out_ref : (B*Tt, Ts*C)  lane-dense rows
    a_ref                              : (KH, Ts*C, Ts*C)  folded conv taps
    """
    R, SC = x_ref.shape

    # zero_out_conv_input: one lane-dense multiply with the precombined mask.
    xm = x_ref[...] * keep_ref[...]                               # (R, SC)

    acc = jnp.zeros((R, SC), jnp.float32)
    for kh in range(KH):                 # causal kernel rows along target axis
        back = pt - kh * dt              # how many target rows this tap looks back
        if back == 0:
            tap = xm
        else:
            # Shift rows down by `back` with zero fill (stays in vregs; no
            # padded VMEM scratch), then zero rows whose look-back would cross
            # a batch boundary (t < back).
            tap = jnp.concatenate(
                [jnp.zeros((back, SC), jnp.float32), xm[:R - back, :]], axis=0)
            t_idx = lax.broadcasted_iota(jnp.int32, (R, SC), 0) % Tt
            tap = jnp.where(t_idx < back, 0.0, tap)
        acc = acc + jnp.dot(tap, a_ref[kh], preferred_element_type=jnp.float32)

    # conv biases (b1 routed through conv2, plus b2) are a precomputed map;
    # convolution_dropout = 0.0 -> identity.
    out_ref[...] = (acc + bias_ref[...]).astype(out_ref.dtype)


@functools.partial(jax.jit, static_argnames=("K", "dt", "ds", "pt", "ps"))
def conv_layer_forward(x, enc_mask, dec_mask, W1_pt, b1, W2_pt, b2, *,
                       K, dt, ds, pt, ps):
    """x: (B, Tt, Ts, C). enc_mask: (B, Ts). dec_mask: (B, Tt).

    PyTorch-layout parameters:
      W1_pt: (M, C)  conv1 1x1 weight, b1: (M,)
      W2_pt: (C, M, K, K)  mconv2 weight (causal rows > K//2 are dropped here),
      b2: (C,)
    Returns (B, Tt, Ts, C).
    """
    B, Tt, Ts, C = x.shape
    KH = K // 2 + 1                       # causal rows kept by MaskedConvolution
    assert (KH - 1) * dt - pt <= 0, "expects backward-looking (causal) target taps"
    R, SC = B * Tt, Ts * C
    f32 = jnp.float32

    # ---------- parameter folding (data independent) ----------
    # conv1 folded into each causal conv2 tap: Wc[kh, kw, c_in, c_out].
    Wc = jnp.einsum("mc,omhw->hwco", W1_pt.astype(f32), W2_pt.astype(f32))[:KH]

    # Source-axis Toeplitz matrices: A[kh] maps a full (Ts*C) input row to a
    # full (Ts*C) output row (zero-padding along the source axis built in).
    si = jnp.arange(Ts)[:, None]
    so = jnp.arange(Ts)[None, :]
    A5 = jnp.zeros((KH, Ts, C, Ts, C), f32)
    for kw in range(K):
        sel = (si == so + kw * ds - ps).astype(f32)            # (Ts_in, Ts_out)
        A5 = A5 + jnp.einsum("io,kcd->kicod", sel, Wc[:, kw])
    A = A5.reshape(KH, SC, SC)

    # b1 routed through conv2 is only present where a tap lands inside the
    # un-padded region -> spatially varying, data-independent bias map (+ b2).
    v = jnp.einsum("m,omhw->hwo", b1.astype(f32), W2_pt.astype(f32))[:KH]
    t_ar = jnp.arange(Tt)
    s_ar = jnp.arange(Ts)
    bmap = jnp.broadcast_to(b2.astype(f32), (Tt, Ts, C))
    for kh in range(KH):
        ti = t_ar + kh * dt - pt
        vt = ((ti >= 0) & (ti < Tt)).astype(f32)               # (Tt,)
        for kw in range(K):
            sj = s_ar + kw * ds - ps
            vs = ((sj >= 0) & (sj < Ts)).astype(f32)           # (Ts,)
            bmap = bmap + vt[:, None, None] * vs[None, :, None] * v[kh, kw][None, None, :]
    bias2d = jnp.tile(bmap.reshape(Tt, SC), (B, 1))            # (R, SC)

    # ---------- per-call re-layout (free, row-major contiguous) ----------
    x2d = x.astype(f32).reshape(R, SC)                         # lane-dense rows
    keep = ((1.0 - enc_mask.astype(f32))[:, None, :] *
            (1.0 - dec_mask.astype(f32))[:, :, None])          # (B, Tt, Ts)
    keep2d = jnp.broadcast_to(keep[..., None], (B, Tt, Ts, C)).reshape(R, SC)

    kernel = functools.partial(_conv_layer_kernel, Tt=Tt, KH=KH, pt=pt, dt=dt)

    out2d = pl.pallas_call(
        kernel,
        out_shape=jax.ShapeDtypeStruct((R, SC), f32),
        in_specs=[
            pl.BlockSpec(memory_space=pltpu.MemorySpace.VMEM),   # x rows
            pl.BlockSpec(memory_space=pltpu.MemorySpace.VMEM),   # keep mask
            pl.BlockSpec(memory_space=pltpu.MemorySpace.VMEM),   # folded taps A
            pl.BlockSpec(memory_space=pltpu.MemorySpace.VMEM),   # bias map
        ],
        out_specs=pl.BlockSpec(memory_space=pltpu.MemorySpace.VMEM),
    )(x2d, keep2d, A, bias2d)

    return out2d.reshape(B, Tt, Ts, C).astype(x.dtype)


def reference_forward(x, enc_mask, dec_mask, W1_oc, b1, W2_oihw_masked, b2,
                      *, pt, ps, dt, ds):
    """Pure-JAX reference mirroring the PyTorch NCHW forward."""
    xn = jnp.transpose(x, (0, 3, 1, 2))                        # (B, C, Tt, Ts)
    keep = ((1.0 - enc_mask)[:, None, None, :] *
            (1.0 - dec_mask)[:, None, :, None])
    xn = xn * keep
    y = lax.conv_general_dilated(xn, W1_oc[:, :, None, None], (1, 1), 'VALID',
                                 dimension_numbers=('NCHW', 'OIHW', 'NCHW'))
    y = y + b1[None, :, None, None]
    o = lax.conv_general_dilated(y, W2_oihw_masked, (1, 1),
                                 [(pt, pt), (ps, ps)], rhs_dilation=(dt, ds),
                                 dimension_numbers=('NCHW', 'OIHW', 'NCHW'))
    o = o + b2[None, :, None, None]
    return jnp.transpose(o, (0, 2, 3, 1))                      # (B, Tt, Ts, C)


if __name__ == "__main__":
    # ---- config (args) ----
    B, Tt, Ts = 2, 8, 8
    C = 8          # num_features
    M = 4          # reduce_dim (mid_features)
    K = 3          # kernel_size
    dt, ds = 1, 1  # target_dilation, source_dilation
    pt = dt * (K - 1) // 2   # maintain_resolution=True padding (target)
    ps = ds * (K - 1) // 2   # maintain_resolution=True padding (source)
    KH = K // 2 + 1          # causal (non-masked) kernel rows along target axis

    key = jax.random.PRNGKey(0)
    kx, ke, kd, k1, k2, k3, k4 = jax.random.split(key, 7)

    x = jax.random.normal(kx, (B, Tt, Ts, C), dtype=jnp.float32)

    # encoder_mask: (B, Ts), decoder_mask: (B, Tt); 1.0 where masked_fill zeroes.
    enc_mask = (jnp.arange(Ts)[None, :] >=
                jnp.array([Ts, Ts - 2])[:, None]).astype(jnp.float32)
    dec_mask = (jnp.arange(Tt)[None, :] >=
                jnp.array([Tt - 1, Tt])[:, None]).astype(jnp.float32)

    # PyTorch-layout parameters (deterministic synthetic init).
    W1_pt = 0.1 * jax.random.normal(k1, (M, C), dtype=jnp.float32)        # conv1 (O,I,1,1)
    b1 = 0.1 * jax.random.normal(k2, (M,), dtype=jnp.float32)
    W2_pt = 0.1 * jax.random.normal(k3, (C, M, K, K), dtype=jnp.float32)  # mconv2 (O,I,K,K)
    b2 = 0.1 * jax.random.normal(k4, (C,), dtype=jnp.float32)

    # Causal mask on the target (H) kernel axis: rows > K//2 are zeroed.
    row_mask = (jnp.arange(K) < KH).astype(jnp.float32)[None, None, :, None]
    W2_masked = W2_pt * row_mask

    out = conv_layer_forward(x, enc_mask, dec_mask, W1_pt, b1, W2_pt, b2,
                             K=K, dt=dt, ds=ds, pt=pt, ps=ps)
    out = jax.block_until_ready(out)

    ref = reference_forward(x, enc_mask, dec_mask, W1_pt, b1, W2_masked, b2,
                            pt=pt, ps=ps, dt=dt, ds=ds)
    assert out.shape == (B, Tt, Ts, C)
    assert jnp.allclose(out, ref, rtol=1e-4, atol=1e-4)

    print("KERNEL_OK")
</pallas_src>

<mosaic_0001>
module attributes {stable_mosaic.version = 11 : i64} {
  func.func @_conv_layer_kernel(%arg0: memref<16x64xf32, #tpu.memory_space<vmem>>, %arg1: memref<16x64xf32, #tpu.memory_space<vmem>>, %arg2: memref<2x64x64xf32, #tpu.memory_space<vmem>>, %arg3: memref<16x64xf32, #tpu.memory_space<vmem>>, %arg4: memref<16x64xf32, #tpu.memory_space<vmem>>) attributes {dimension_semantics = [], scalar_prefetch = 0 : i64, scratch_operands = 0 : i64, tpu.core_type = #tpu.core_type<tc>} {
    %c0 = arith.constant 0 : index
    %c0_0 = arith.constant 0 : index
    %0 = vector.load %arg0[%c0, %c0_0] : memref<16x64xf32, #tpu.memory_space<vmem>>, vector<16x64xf32>
    %c0_1 = arith.constant 0 : index
    %c0_2 = arith.constant 0 : index
    %1 = vector.load %arg1[%c0_1, %c0_2] : memref<16x64xf32, #tpu.memory_space<vmem>>, vector<16x64xf32>
    %2 = arith.mulf %0, %1 : vector<16x64xf32>
    %cst = arith.constant 0.000000e+00 : f32
    %3 = vector.broadcast %cst : f32 to vector<16x64xf32>
    %cst_3 = arith.constant 0.000000e+00 : f32
    %4 = vector.broadcast %cst_3 : f32 to vector<1x64xf32>
    %5 = vector.extract_strided_slice %2 {offsets = [0, 0], sizes = [15, 64], strides = [1, 1]} : vector<16x64xf32> to vector<15x64xf32>
    %6 = tpu.concatenate %4, %5 in 0 : vector<1x64xf32>, vector<15x64xf32> -> vector<16x64xf32>
    %7 = tpu.iota {dimensions = array<i32: 0>} : vector<16x64xi32>
    %c8_i32 = arith.constant 8 : i32
    %c0_i32 = arith.constant 0 : i32
    %8 = arith.cmpi eq, %c8_i32, %c0_i32 : i32
    %c1_i32 = arith.constant 1 : i32
    %9 = arith.select %8, %c1_i32, %c8_i32 : i32
    %10 = vector.broadcast %9 : i32 to vector<16x64xi32>
    %11 = arith.remsi %7, %10 : vector<16x64xi32>
    %c0_i32_4 = arith.constant 0 : i32
    %12 = vector.broadcast %c0_i32_4 : i32 to vector<16x64xi32>
    %13 = arith.cmpi ne, %11, %12 : vector<16x64xi32>
    %c0_i32_5 = arith.constant 0 : i32
    %14 = vector.broadcast %c0_i32_5 : i32 to vector<16x64xi32>
    %15 = arith.cmpi slt, %11, %14 : vector<16x64xi32>
    %c0_i32_6 = arith.constant 0 : i32
    %16 = arith.cmpi slt, %9, %c0_i32_6 : i32
    %17 = vector.broadcast %16 : i1 to vector<16x64xi1>
    %18 = vector.broadcast %17 : vector<16x64xi1> to vector<16x64xi1>
    %19 = arith.xori %15, %18 : vector<16x64xi1>
    %20 = arith.andi %19, %13 : vector<16x64xi1>
    %21 = vector.broadcast %9 : i32 to vector<16x64xi32>
    %22 = arith.addi %11, %21 : vector<16x64xi32>
    %23 = arith.select %20, %22, %11 : vector<16x64xi1>, vector<16x64xi32>
    %c1_i32_7 = arith.constant 1 : i32
    %24 = vector.broadcast %c1_i32_7 : i32 to vector<16x64xi32>
    %25 = arith.cmpi slt, %23, %24 : vector<16x64xi32>
    %cst_8 = arith.constant 0.000000e+00 : f32
    %26 = vector.broadcast %cst_8 : f32 to vector<16x64xf32>
    %27 = arith.select %25, %26, %6 : vector<16x64xi1>, vector<16x64xf32>
    %c0_9 = arith.constant 0 : index
    %c0_10 = arith.constant 0 : index
    %c0_11 = arith.constant 0 : index
    %28 = vector.load %arg2[%c0_9, %c0_10, %c0_11] : memref<2x64x64xf32, #tpu.memory_space<vmem>>, vector<1x64x64xf32>
    %29 = vector.shape_cast %28 : vector<1x64x64xf32> to vector<64x64xf32>
    %cst_12 = arith.constant dense<0.000000e+00> : vector<16x64xf32>
    %30 = tpu.matmul %27, %29, %cst_12 {dimension_numbers = #tpu.dot_dimension_numbers<[1], [0], [0], [1], [0, 0, 1, 1], [], []>} : vector<16x64xf32>, vector<64x64xf32>, vector<16x64xf32> -> vector<16x64xf32>
    %31 = arith.addf %3, %30 : vector<16x64xf32>
    %c1 = arith.constant 1 : index
    %c0_13 = arith.constant 0 : index
    %c0_14 = arith.constant 0 : index
    %32 = vector.load %arg2[%c1, %c0_13, %c0_14] : memref<2x64x64xf32, #tpu.memory_space<vmem>>, vector<1x64x64xf32>
    %33 = vector.shape_cast %32 : vector<1x64x64xf32> to vector<64x64xf32>
    %cst_15 = arith.constant dense<0.000000e+00> : vector<16x64xf32>
    %34 = tpu.matmul %2, %33, %cst_15 {dimension_numbers = #tpu.dot_dimension_numbers<[1], [0], [0], [1], [0, 0, 1, 1], [], []>} : vector<16x64xf32>, vector<64x64xf32>, vector<16x64xf32> -> vector<16x64xf32>
    %35 = arith.addf %31, %34 : vector<16x64xf32>
    %c0_16 = arith.constant 0 : index
    %c0_17 = arith.constant 0 : index
    %36 = vector.load %arg3[%c0_16, %c0_17] : memref<16x64xf32, #tpu.memory_space<vmem>>, vector<16x64xf32>
    %37 = arith.addf %35, %36 : vector<16x64xf32>
    %c0_18 = arith.constant 0 : index
    %c0_19 = arith.constant 0 : index
    %38 = vector.load %arg4[%c0_18, %c0_19] : memref<16x64xf32, #tpu.memory_space<vmem>>, vector<16x64xf32>
    tpu.vector_store %arg4[%c0_18, %c0_19], %37 {strides = array<i32>} : memref<16x64xf32, #tpu.memory_space<vmem>>, vector<16x64xf32>,
    return
  }
}

</mosaic_0001>

<bundles_post_ra>
// kernel: conv_layer_forward.1
= control target key start
LH: loop header
LB: loop body
LE: loop exit
PB: predicated region body
PF: predicated region fallthrough
CT: control target
= control target key end

     0   :  { %v32_v0 = vlaneseq  ;;  %vm25_vm0 = vcmask 1040384   ;;  %vm80_vm3 = vcmask 523264   ;;  %s438_s2 = inlined_call_operand.vmem [shape: f32[2,64,64], index: 2, kind: input, shape index: {}]   ;;  %s439_s0 = inlined_call_operand.vmem [shape: f32[16,64], index: 0, kind: input, shape index: {}]   ;;  %s440_s1 = inlined_call_operand.vmem [shape: f32[16,64], index: 1, kind: input, shape index: {}]   ;;  %s441_s3 = inlined_call_operand.vmem [shape: f32[16,64], index: 3, kind: input, shape index: {}]   ;;  %s442_s4 = inlined_call_operand.vmem [shape: f32[16,64], index: 4, kind: output, shape index: {}]  }
   0x1   :  { %v258_v1 = vld [vmem:[%s438_s2 + $0x78] sm:$0xff]  ;;  %v257_v3 = vld [vmem:[%s438_s2 + $0x70] sm:$0xff]  ;;  %v256_v6 = vld [vmem:[%s438_s2 + $0x68] sm:$0xff] }
   0x2   :  { %v70_v2 = vld [vmem:[%s438_s2 + $0x38] sm:$0xff]  ;;  %283 = vmatprep.subr.mxu0 %v258_v1  ;;  %v69_v4 = vld [vmem:[%s438_s2 + $0x30] sm:$0xff]  ;;  %v33_v5 = vshrl.u32 %v32_v0, 7  ;;  %v68_v7 = vld [vmem:[%s438_s2 + $0x28] sm:$0xff] }
   0x3   :  { %302 = vmatprep.subr.mxu1 %v70_v2  ;;  %284 = vmatpush3.msra.mxu0 %v258_v1  ;;  %v255_v8 = vld [vmem:[%s438_s2 + $0x60] sm:$0xff]  ;;  %v254_v11 = vld [vmem:[%s438_s2 + $0x58] sm:$0xff]  ;;  %v18_v13 = vld [vmem:[%s439_s0 + $0x8] sm:$0xff] }
   0x4   :  { %303 = vmatpush3.msra.mxu1 %v70_v2  ;;  %285 = vmatprep.subr.mxu0 %v257_v3  ;;  %v67_v9 = vld [vmem:[%s438_s2 + $0x20] sm:$0xff]  ;;  %v34_v10 = vadd.s32 8, %v33_v5  ;;  %v66_v14 = vld [vmem:[%s438_s2 + $0x18] sm:$0xff]  ;;  %v20_v16 = vld [vmem:[%s440_s1 + $0x8] sm:$0xff]  ;;  %v39_v19 = vand.u32 7, %v33_v5 }
   0x5   :  { %304 = vmatprep.subr.mxu1 %v69_v4  ;;  %286 = vmatpush3.msra.mxu0 %v257_v3  ;;  %v17_v12 = vld [vmem:[%s439_s0] sm:$0xff]  ;;  %v22_v18 = vmul.f32 %v20_v16, %v18_v13  ;;  %v253_v20 = vld [vmem:[%s438_s2 + $0x50] sm:$0xff]  ;;  %v252_v25 = vld [vmem:[%s438_s2 + $0x48] sm:$0xff] }
   0x6   :  { %305 = vmatpush3.msra.mxu1 %v69_v4  ;;  %287 = vmatprep.subr.mxu0 %v256_v6  ;;  %v19_v15 = vld [vmem:[%s440_s1] sm:$0xff]  ;;  %v65_v21 = vld [vmem:[%s438_s2 + $0x10] sm:$0xff]  ;;  %v46_v22 = vand.u32 7, %v34_v10  ;;  %v64_v26 = vld [vmem:[%s438_s2 + $0x8] sm:$0xff]  ;;  %vm401_vm1 = vcmp.lt.s32.totalorder %v39_v19, 1 }
   0x7   :  { %306 = vmatprep.subr.mxu1 %v68_v7  ;;  %288 = vmatpush3.msra.mxu0 %v256_v6  ;;  %v21_v17 = vmul.f32 %v19_v15, %v17_v12  ;;  %v27_v23 = vrot.slane %v22_v18, 7  ;;  %v251_v29 = vld [vmem:[%s438_s2 + $0x40] sm:$0xff]  ;;  %v242_v37 = vld [vmem:[%s441_s3 + $0x8] sm:$0xff] }
   0x8   :  { %307 = vmatpush3.msra.mxu1 %v68_v7  ;;  %289 = vmatprep.subr.mxu0 %v255_v8  ;;  %v63_v30 = vld [vmem:[%s438_s2] sm:$0xff]  ;;  %vm412_vm2 = vcmp.lt.s32.totalorder %v46_v22, 1 }
   0x9   :  { %308 = vmatprep.subr.mxu1 %v67_v9  ;;  %290 = vmatpush3.msra.mxu0 %v255_v8  ;;  %v26_v24 = vrot.slane %v21_v17, 7  ;;  %v241_v41 = vld [vmem:[%s441_s3] sm:$0xff] }
   0xa   :  { %309 = vmatpush3.msra.mxu1 %v67_v9  ;;  %291 = vmatprep.subr.mxu0 %v254_v11 }
   0xb   :  { %310 = vmatprep.subr.mxu1 %v66_v14  ;;  %292 = vmatpush3.msra.mxu0 %v254_v11  ;;  %v31_v27 = vsel %vm25_vm0, 0.0, %v26_v24  ;;  %v28_v31 = vsel %vm25_vm0, %v26_v24, %v27_v23 }
   0xc   :  { %311 = vmatpush3.msra.mxu1 %v66_v14  ;;  %293 = vmatprep.subr.mxu0 %v253_v20  ;;  %v61_v33 = vsel %vm401_vm1, 0.0, %v31_v27  ;;  %v62_v34 = vsel %vm412_vm2, 0.0, %v28_v31 }
   0xd   :  { %312 = vmatprep.subr.mxu1 %v65_v21  ;;  %294 = vmatpush3.msra.mxu0 %v253_v20 }
   0xe   :  { %313 = vmatpush3.msra.mxu1 %v65_v21  ;;  %295 = vmatprep.subr.mxu0 %v252_v25 }
   0xf   :  { %314 = vmatprep.subr.mxu1 %v64_v26  ;;  %296 = vmatpush3.msra.mxu0 %v252_v25 }
  0x10   :  { %315 = vmatpush3.msra.mxu1 %v64_v26  ;;  %297 = vmatprep.subr.mxu0 %v251_v29 }
  0x11   :  { %316 = vmatprep.subr.mxu1 %v63_v30  ;;  %298 = vmatpush3.msra.mxu0 %v251_v29 }
  0x12   :  { %299 = vmatprep.mubr.msk.f32.mxu0 %vm80_vm3, %v21_v17  ;;  %317 = vmatpush3.msra.mxu1 %v63_v30 }
  0x13   :  { %318 = vmatprep.mubr.msk.f32.mxu1 %vm80_vm3, %v61_v33  ;;  %300 = vmatmul.mubr.msk.f32.vlgmr.msra.gmra.mxu0 %vm80_vm3, %v22_v18 }
  0x14   :  { %319 = vmatmul.mubr.msk.f32.vlgmr.msra.gmra.mxu1 %vm80_vm3, %v62_v34 }
  0xd3   :  { %v301_v35 = vpop.f32.mrf.mxu0 }
  0xd4   :  { %v320_v36 = vpop.f32.mrf.mxu1 }
  0xd5   :  { %v238_v38 = vadd.f32 %v320_v36, %v301_v35  ;;  %v151_v39 = vpop.f32.mrf.mxu0 }
  0xd6   :  { %v232_v40 = vpop.f32.mrf.mxu1 }
  0xd7   :  { %v244_v42 = vadd.f32 %v242_v37, %v238_v38  ;;  %v233_v43 = vadd.f32 %v232_v40, %v151_v39 }
  0xd9   :  { %246 = vst.msk [vmem:[%s442_s4 + $0x8] sm:$0xff] %vm80_vm3, %v244_v42  ;;  %v243_v44 = vadd.f32 %v241_v41, %v233_v43 }
  0xdb   :  { %245 = vst.msk [vmem:[%s442_s4] sm:$0xff] %vm80_vm3, %v243_v44 }

</bundles_post_ra>
